<compile_context>
chip_gen: v5e
topology: v5e:2x2
jax: 0.10.0
libtpu: 0.0.40
codegen_flags: <defaults>
</compile_context>

<pallas_src>
import jax
import jax.numpy as jnp
from jax.experimental import pallas as pl
from jax.experimental.pallas import tpu as pltpu


_GUARD = 20.0                       # tanh(softplus(20)) == 1.0 to f32 precision
_TARGET_BLOCK_BYTES = 4 * 1024 * 1024   # ~4 MiB per block


def _mish_kernel(x_ref, o_ref):
    x = x_ref[...].astype(jnp.float32)
    big = x > _GUARD                          # reuse mask for clamp + final select
    xc = jnp.where(big, _GUARD, x)            # avoid exp overflow for large x
    e = jnp.exp(xc)
    num = e * (e + 2.0)
    # tanh(softplus(x)) == (e^2 + 2e) / (e^2 + 2e + 2); exact divide for accuracy.
    y = x * (num / (num + 2.0))
    o_ref[...] = jnp.where(big, x, y).astype(o_ref.dtype)


def _mish_jnp(x):
    """Plain-JAX Mish (used only for the <128-element tail and as reference)."""
    xf = x.astype(jnp.float32)
    return (xf * jnp.tanh(jax.nn.softplus(xf))).astype(x.dtype)


def mish(x):
    """Apply Mish elementwise to an arbitrary-shaped array via a Pallas TPU kernel."""
    orig_shape = x.shape
    dtype = x.dtype
    n = x.size
    if n == 0:
        return x

    flat = jnp.ravel(x)
    n_main = (n // 128) * 128
    if n_main == 0:
        # Tiny input (< 128 elements): not worth a kernel launch.
        return _mish_jnp(flat).reshape(orig_shape)

    # Lane-dense slab: widest cols (multiple of 128) dividing n_main; block is
    # full-width so each block is one contiguous HBM range.
    cols = 128
    for c in (4096, 2048, 1024, 512, 256):
        if n_main % c == 0:
            cols = c
            break
    rows = n_main // cols
    x2d = flat[:n_main].reshape(rows, cols)   # pure reshape for contiguous inputs

    itemsize = jnp.dtype(dtype).itemsize
    # Byte-targeted row-block size (multiple of 8 sublanes), capped at full rows.
    brows = max(8, (_TARGET_BLOCK_BYTES // (cols * itemsize)) // 8 * 8)
    brows = min(brows, rows)
    if brows == rows and rows >= 16:
        # Guarantee >=2 blocks on the parallel axis so both v7x TensorCores get work.
        brows = min(rows, ((rows + 1) // 2 + 7) // 8 * 8)

    grid = (pl.cdiv(rows, brows),)
    cost = pl.CostEstimate(
        flops=7 * n_main,
        transcendentals=n_main,
        bytes_accessed=2 * n_main * itemsize,
    )

    out_main = pl.pallas_call(
        _mish_kernel,
        out_shape=jax.ShapeDtypeStruct((rows, cols), dtype),
        grid_spec=pltpu.PrefetchScalarGridSpec(
            num_scalar_prefetch=0,
            grid=grid,
            in_specs=[pl.BlockSpec((brows, cols), lambda i: (i, 0))],
            out_specs=pl.BlockSpec((brows, cols), lambda i: (i, 0)),
        ),
        compiler_params=pltpu.CompilerParams(
            dimension_semantics=("parallel",),
            vmem_limit_bytes=32 * 1024 * 1024,
        ),
        cost_estimate=cost,
    )(x2d).reshape(-1)

    if n_main == n:
        return out_main.reshape(orig_shape)
    # Handle the <128-element tail with plain jnp (no pad/crop HBM round trips).
    tail = _mish_jnp(flat[n_main:])
    return jnp.concatenate([out_main, tail]).reshape(orig_shape)


if __name__ == "__main__":
    key = jax.random.PRNGKey(0)

    # Primary check: NCHW activation tensor, size divisible by 128.
    x = jax.random.normal(key, (2, 4, 16, 16), dtype=jnp.float32)
    y = mish(x)
    jax.block_until_ready(y)
    y_ref = _mish_jnp(x)
    assert y.shape == x.shape and y.dtype == x.dtype
    assert jnp.allclose(y, y_ref, atol=1e-5, rtol=1e-5), "mismatch vs reference"

    # Secondary check: odd size (exercises the kernel + tail path, no pad/crop).
    x2 = jax.random.normal(jax.random.PRNGKey(1), (3, 50, 7), dtype=jnp.float32)
    y2 = mish(x2)
    jax.block_until_ready(y2)
    assert jnp.allclose(y2, _mish_jnp(x2), atol=1e-5, rtol=1e-5), "mismatch (odd size)"

    print("KERNEL_OK")
</pallas_src>

<mosaic_0001>
module attributes {stable_mosaic.version = 11 : i64} {
  func.func @_mish_kernel(%arg0: i32, %arg1: memref<1x2048xf32, #tpu.memory_space<vmem>>, %arg2: memref<1x2048xf32, #tpu.memory_space<vmem>>) attributes {dimension_semantics = [#tpu.dimension_semantics<parallel>], iteration_bounds = array<i64: 1>, scalar_prefetch = 0 : i64, scratch_operands = 0 : i64, tpu.core_type = #tpu.core_type<tc>, window_params = [{transform_indices = @transform_0, window_bounds = array<i64: 1, 2048>}, {transform_indices = @transform_1, window_bounds = array<i64: 1, 2048>}]} {
    %c0 = arith.constant 0 : index
    %c0_0 = arith.constant 0 : index
    %0 = vector.load %arg1[%c0, %c0_0] : memref<1x2048xf32, #tpu.memory_space<vmem>>, vector<1x2048xf32>
    %cst = arith.constant 2.000000e+01 : f32
    %1 = vector.broadcast %cst : f32 to vector<1x2048xf32>
    %2 = arith.cmpf ogt, %0, %1 : vector<1x2048xf32>
    %cst_1 = arith.constant 2.000000e+01 : f32
    %3 = vector.broadcast %cst_1 : f32 to vector<1x2048xf32>
    %4 = arith.select %2, %3, %0 : vector<1x2048xi1>, vector<1x2048xf32>
    %5 = math.exp %4 : vector<1x2048xf32>
    %cst_2 = arith.constant 2.000000e+00 : f32
    %6 = vector.broadcast %cst_2 : f32 to vector<1x2048xf32>
    %7 = arith.addf %5, %6 : vector<1x2048xf32>
    %8 = arith.mulf %5, %7 : vector<1x2048xf32>
    %cst_3 = arith.constant 2.000000e+00 : f32
    %9 = vector.broadcast %cst_3 : f32 to vector<1x2048xf32>
    %10 = arith.addf %8, %9 : vector<1x2048xf32>
    %11 = arith.divf %8, %10 : vector<1x2048xf32>
    %12 = arith.mulf %0, %11 : vector<1x2048xf32>
    %13 = arith.select %2, %0, %12 : vector<1x2048xi1>, vector<1x2048xf32>
    %c0_4 = arith.constant 0 : index
    %c0_5 = arith.constant 0 : index
    %14 = vector.load %arg2[%c0_4, %c0_5] : memref<1x2048xf32, #tpu.memory_space<vmem>>, vector<1x2048xf32>
    tpu.vector_store %arg2[%c0_4, %c0_5], %13 {strides = array<i32>} : memref<1x2048xf32, #tpu.memory_space<vmem>>, vector<1x2048xf32>,
    return
  }
  func.func @transform_0(%arg0: i32) -> (i32, i32) {
    %c0_i32 = arith.constant 0 : i32
    %c0_i32_0 = arith.constant 0 : i32
    return %arg0, %c0_i32 : i32, i32
  }
  func.func @transform_1(%arg0: i32) -> (i32, i32) {
    %c0_i32 = arith.constant 0 : i32
    %c0_i32_0 = arith.constant 0 : i32
    return %arg0, %c0_i32 : i32, i32
  }
}

</mosaic_0001>

<bundles_post_ra>
// kernel: tpu_custom_call.1
= control target key start
LH: loop header
LB: loop body
LE: loop exit
PB: predicated region body
PF: predicated region fallthrough
CT: control target
= control target key end

     0   :  { %6 = vsyncpa [#allocation3], 0  ;;  %s176_s0 = inlined_call_operand.hbm [shape: f32[1,2048], index: 0, kind: input, shape index: {}]   ;;  %s177_s1 = inlined_call_operand.hbm [shape: f32[1,2048], index: 1, kind: output, shape index: {}]  }
   0x1   :  { %7 = vsyncpa [#allocation4], 0  ;;  %s13_s8 = sshll.u32 %s176_s0, 4  ;;  %s154_s9 = smov [#allocation2]   ;;  %s14_s8 = int_to_ptr.hbm [resolvable:$true] %s13_s8 }
   0x2   :  { %s15_s10 = sshll.u32 %s154_s9, 4  ;;  %s16_s10 = int_to_ptr.vmem [resolvable:$true] %s15_s10 }
   0x3   :  { %18 = dma.hbm_to_vmem [thread:$0]  %s14_s8, 256, %s16_s10, [#allocation3]  }
   0x4   :  { %150 = dma.done.wait [#allocation3], 256  }
   0x5   :  { %151 = vsyncadd [#allocation3], 4294967040  ;;  %v23_v0 = vld [vmem:[#allocation2] sm:$0xff]  ;;  %v24_v1 = vld [vmem:[#allocation2 + $0x8] sm:$0xff]  ;;  %s155_s0 = smov [#allocation5]   ;;  %s82_s14 = sshll.u32 %s177_s1, 4  ;;  %s83_s14 = int_to_ptr.hbm [resolvable:$true] %s82_s14 }
   0x6   :  { %vm25_vm0 = vcmp.gt.f32.partialorder %v23_v0, 20.0  ;;  %vm26_vm1 = vcmp.gt.f32.partialorder %v24_v1, 20.0  ;;  %s80_s11 = sshll.u32 %s155_s0, 4  ;;  %s81_s11 = int_to_ptr.vmem [resolvable:$true] %s80_s11 }
   0x7   :  { %v27_v2 = vsel %vm25_vm0, 20.0, %v23_v0  ;;  %v28_v3 = vsel %vm26_vm1, 20.0, %v24_v1 }
   0x8   :  { %v29_v4 = vmul.f32 1.442695, %v27_v2  ;;  %v31_v5 = vmul.f32 1.442695, %v28_v3 }
   0xa   :  { %94 = vpow2.f32 %v29_v4 }
   0xb   :  { %96 = vpow2.f32 %v31_v5 }
  0x10   :  { %v95_v6 = vpop.eup %94 }
  0x11   :  { %v97_v7 = vpop.eup %96  ;;  %v33_v8 = vadd.f32 2.0, %v95_v6 }
  0x12   :  { %v34_v9 = vadd.f32 2.0, %v97_v7 }
  0x13   :  { %v35_v10 = vmul.f32 %v95_v6, %v33_v8 }
  0x14   :  { %v36_v11 = vmul.f32 %v97_v7, %v34_v9 }
  0x15   :  { %v37_v12 = vadd.f32 2.0, %v35_v10 }
  0x16   :  { %v38_v13 = vadd.f32 2.0, %v36_v11 }
  0x17   :  { %98 = vrcp.f32 %v37_v12  ;;  %vm44_vm2 = vweird.f32 %v37_v12  ;;  %v50_v17 = vand.u32 2147483648, %v37_v12  ;;  %v48_v20 = vand.u32 2147483647, %v37_v12 }
  0x18   :  { %100 = vrcp.f32 %v38_v13  ;;  %v65_v21 = vand.u32 2147483648, %v38_v13  ;;  %vm59_vm4 = vweird.f32 %v38_v13  ;;  %v63_v23 = vand.u32 2147483647, %v38_v13 }
  0x19   :  { %v51_v25 = vor.u32 1.1754944e-38, %v50_v17  ;;  %vm49_vm7 = vcmp.eq.f32.partialorder %v48_v20, 8.507059e+37 }
  0x1a   :  { %v66_v28 = vor.u32 1.1754944e-38, %v65_v21  ;;  %vm64_vm9 = vcmp.eq.f32.partialorder %v63_v23, 8.507059e+37 }
  0x1d   :  { %v99_v14 = vpop.eup %98 }
  0x1e   :  { %v101_v15 = vpop.eup %100  ;;  %v40_v16 = vmul.f32 %v99_v14, %v37_v12  ;;  %vm45_vm3 = vweird.f32 %v99_v14 }
  0x1f   :  { %v55_v18 = vmul.f32 %v101_v15, %v38_v13  ;;  %vm60_vm5 = vweird.f32 %v101_v15  ;;  %vm46_vm6 = vmor %vm44_vm2, %vm45_vm3 }
  0x20   :  { %v41_v19 = vsub.f32 1.0, %v40_v16  ;;  %vm61_vm8 = vmor %vm59_vm4, %vm60_vm5 }
  0x21   :  { %v56_v22 = vsub.f32 1.0, %v55_v18 }
  0x22   :  { %v42_v24 = vmul.f32 %v99_v14, %v41_v19 }
  0x23   :  { %v57_v26 = vmul.f32 %v101_v15, %v56_v22 }
  0x24   :  { %v43_v27 = vadd.f32 %v99_v14, %v42_v24 }
  0x25   :  { %v58_v29 = vadd.f32 %v101_v15, %v57_v26 }
  0x26   :  { %v47_v30 = vsel %vm46_vm6, %v99_v14, %v43_v27 }
  0x27   :  { %v52_v31 = vsel %vm49_vm7, %v51_v25, %v47_v30  ;;  %v62_v32 = vsel %vm61_vm8, %v101_v15, %v58_v29 }
  0x28   :  { %v53_v33 = vmul.f32 %v52_v31, %v35_v10  ;;  %v67_v34 = vsel %vm64_vm9, %v66_v28, %v62_v32 }
  0x29   :  { %v68_v35 = vmul.f32 %v67_v34, %v36_v11 }
  0x2a   :  { %v69_v36 = vmul.f32 %v53_v33, %v23_v0 }
  0x2b   :  { %v70_v37 = vmul.f32 %v68_v35, %v24_v1 }
  0x2c   :  { %v71_v38 = vsel %vm25_vm0, %v23_v0, %v69_v36 }
  0x2d   :  { %73 = vst [vmem:[#allocation5] sm:$0xff] %v71_v38  ;;  %v72_v39 = vsel %vm26_vm1, %v24_v1, %v70_v37 }
  0x2e   :  { %74 = vst [vmem:[#allocation5 + $0x8] sm:$0xff] %v72_v39 }
  0x2f   :  { %85 = dma.vmem_to_hbm [thread:$0]  %s81_s11, 256, %s83_s14, [#allocation4]  }
  0x30   :  { %152 = dma.done.wait [#allocation4], 256  }
  0x31   :  { %153 = vsyncadd [#allocation4], 4294967040 }
  0x32   :  { %90 = vsyncpa [#allocation3], 1 }
  0x33   :  { %91 = vsyncpa [#allocation4], 1 }

</bundles_post_ra>
